<compile_context>
chip_gen: v7x
topology: tpu7x:2x2x1
jax: 0.10.0
libtpu: 0.0.40
codegen_flags: <defaults>
</compile_context>

<pallas_src>
import functools
import math

import jax
import jax.numpy as jnp
from jax.experimental import pallas as pl
from jax.experimental.pallas import tpu as pltpu

LANE_PAD = 128   # all layer widths here are <= 120, so one 128-lane tile


# ---------------------------------------------------------------------------
# Replicate the PyTorch layer-shape generation EXACTLY (same float stepping
# and int() truncation), so the kernel matches the module's architecture.
# ---------------------------------------------------------------------------
def gen_even_step_layer_dims(starting_dim, end_dim, layer_number):
    dim_step_size = (end_dim - starting_dim) / layer_number
    last_out_dim = starting_dim
    next_out_dim = starting_dim + dim_step_size
    if end_dim > starting_dim:
        end_cond = lambda dim: dim < end_dim
    else:
        end_cond = lambda dim: dim > end_dim
    shapes = []
    while end_cond(next_out_dim):
        shapes.append((int(last_out_dim), int(next_out_dim)))
        last_out_dim = next_out_dim
        next_out_dim = last_out_dim + dim_step_size
    return shapes, last_out_dim


def diamond_layer_shapes(input_dim):
    """(in, out) shape of every nn.Linear in DiamondMixesNetwork, in order."""
    up, last = gen_even_step_layer_dims(input_dim, 120, layer_number=5)
    down, last = gen_even_step_layer_dims(last, 3, layer_number=5)
    down.append((int(last), 1))
    return up + down            # Tanh is interspersed between consecutive Linears


# ---------------------------------------------------------------------------
# Parameter packing: one padded bf16 weight stack (MXU operands) and one small
# f32 bias stack (added into the f32 accumulator).  Done once, outside jit.
# ---------------------------------------------------------------------------
def pack_params(weights, biases, pad=LANE_PAD):
    num_layers = len(weights)
    assert num_layers == len(biases)
    w_pack = jnp.zeros((num_layers, pad, pad), jnp.float32)
    b_pack = jnp.zeros((num_layers, 1, pad), jnp.float32)
    for i, (w, b) in enumerate(zip(weights, biases)):
        fan_in, fan_out = w.shape
        assert fan_in <= pad and fan_out <= pad, (
            f"layer {i} shape {w.shape} exceeds LANE_PAD={pad}")
        assert b.shape == (fan_out,), (i, b.shape, fan_out)
        w_pack = w_pack.at[i, :fan_in, :fan_out].set(w.astype(jnp.float32))
        b_pack = b_pack.at[i, 0, :fan_out].set(b.astype(jnp.float32))
    # bf16 weights: native MXU operand format on v5e/v6e/v7x; halves VMEM
    # residency and VMEM->vreg traffic.  Accumulation stays f32 in-kernel.
    return w_pack.astype(jnp.bfloat16), b_pack


# ---------------------------------------------------------------------------
# Kernel: whole Linear/Tanh chain for one (tile_b, 128) batch tile.
#   x_ref: (tile_b, in_dim)  f32   (lane-padded to 128 in-kernel)
#   w_ref: (L, 128, 128)     bf16  (resident; constant index_map)
#   b_ref: (L, 1, 128)       f32   (resident; broadcast over sublanes in the add)
#   o_ref: (tile_b, 128)     f32   (lane-dense store; wrapper slices [:, :1])
# ---------------------------------------------------------------------------
def make_diamond_kernel(num_layers, in_dim, pad):
    def kernel(x_ref, w_ref, b_ref, o_ref):
        x = x_ref[...].astype(jnp.bfloat16)                     # (tile_b, in_dim)
        if in_dim < pad:
            # Zero-extend to 128 lanes in-kernel (cheap; data already in VMEM).
            # Exact: the extra weight rows are zero anyway.
            x = jnp.concatenate(
                [x, jnp.zeros((x.shape[0], pad - in_dim), jnp.bfloat16)],
                axis=1)
        h = jnp.dot(x, w_ref[0],                                # MXU, f32 accum
                    preferred_element_type=jnp.float32) + b_ref[0]
        for i in range(1, num_layers):
            h = jnp.tanh(h)                                     # EUP, f32 (v5e-safe)
            h = jnp.dot(h.astype(jnp.bfloat16), w_ref[i],
                        preferred_element_type=jnp.float32) + b_ref[i]
        o_ref[...] = h                                          # lane-dense vst
    return kernel


def _round_up(n, m):
    return ((n + m - 1) // m) * m


def _pick_tile_b(batch, max_tile):
    """Batch-tile choice: large enough to fill the MXU M-dim and amortize the
    resident weight reads, capped at max_tile, and (when batch allows) small
    enough that the grid has >=2 steps so both v7x TensorCores get work."""
    b8 = _round_up(max(batch, 1), 8)
    if b8 <= 16:
        return b8
    return min(_round_up(max_tile, 8), _round_up((b8 + 1) // 2, 8))


@functools.partial(jax.jit, static_argnames=("max_tile_b",))
def diamond_forward(x, w_pack, b_pack, *, max_tile_b=256):
    """x: (batch, input_dim) f32. Returns (batch, 1) f32.

    max_tile_b: 256 is a good default for v6e/v7x; use 128 on v5e.
    """
    batch, in_dim = x.shape
    num_layers, pad, _ = w_pack.shape
    assert in_dim <= pad, (in_dim, pad)
    assert b_pack.shape == (num_layers, 1, pad), b_pack.shape

    tile_b = _pick_tile_b(batch, max_tile_b)
    b_padded = _round_up(batch, tile_b)
    # Only row padding (if any); no materialized (batch, 128) lane-padded copy.
    x_pad = x if b_padded == batch else jnp.pad(x, ((0, b_padded - batch), (0, 0)))

    out = pl.pallas_call(
        make_diamond_kernel(num_layers, in_dim, pad),
        out_shape=jax.ShapeDtypeStruct((b_padded, pad), jnp.float32),
        grid_spec=pltpu.PrefetchScalarGridSpec(
            num_scalar_prefetch=0,
            grid=(b_padded // tile_b,),
            in_specs=[
                # x tile: full (narrow) last dim, batch tiled on the grid axis
                pl.BlockSpec((tile_b, in_dim), lambda i: (i, 0)),
                # all weights, resident across the grid (constant index_map)
                pl.BlockSpec((num_layers, pad, pad), lambda i: (0, 0, 0)),
                # all biases, resident, broadcast over sublanes in-kernel
                pl.BlockSpec((num_layers, 1, pad), lambda i: (0, 0, 0)),
            ],
            out_specs=pl.BlockSpec((tile_b, pad), lambda i: (i, 0)),
        ),
        compiler_params=pltpu.CompilerParams(
            dimension_semantics=("parallel",)),   # batch tiles shard over v7x TCs
    )(x_pad, w_pack, b_pack)

    return out[:batch, :1]


# ---------------------------------------------------------------------------
# Plain-JAX references for correctness checking.
# ---------------------------------------------------------------------------
def reference(x, weights, biases):
    """Full-f32 reference (matches the PyTorch module numerics)."""
    h = x
    num_layers = len(weights)
    for i, (w, b) in enumerate(zip(weights, biases)):
        h = h @ w + b
        if i < num_layers - 1:
            h = jnp.tanh(h)
    return h


def reference_bf16(x, weights, biases):
    """Emulates the kernel's precision: bf16 matmul operands, f32 accumulation,
    f32 bias add and tanh."""
    h = x
    num_layers = len(weights)
    for i, (w, b) in enumerate(zip(weights, biases)):
        h = jnp.dot(h.astype(jnp.bfloat16), w.astype(jnp.bfloat16),
                    preferred_element_type=jnp.float32) + b
        if i < num_layers - 1:
            h = jnp.tanh(h)
    return h


if __name__ == "__main__":
    input_dim = 8

    shapes = diamond_layer_shapes(input_dim)
    # For input_dim=8: [(8,30),(30,52),(52,75),(75,97),(97,78),(78,59),(59,40),(40,21),(21,1)]

    key = jax.random.PRNGKey(0)
    weights, biases = [], []
    for fan_in, fan_out in shapes:
        key, kw, kb = jax.random.split(key, 3)
        bound = 1.0 / math.sqrt(fan_in)
        # weight stored as (in, out) so y = x @ W + b  ==  torch's x @ W_t.T + b
        weights.append(jax.random.uniform(
            kw, (fan_in, fan_out), jnp.float32, minval=-bound, maxval=bound))
        biases.append(jax.random.uniform(
            kb, (fan_out,), jnp.float32, minval=-bound, maxval=bound))

    w_pack, b_pack = pack_params(weights, biases)

    def run_and_check(batch, kx):
        x = jax.random.normal(kx, (batch, input_dim), jnp.float32)
        y = jax.block_until_ready(diamond_forward(x, w_pack, b_pack))
        assert y.shape == (batch, 1), y.shape
        y_b16 = reference_bf16(x, weights, biases)   # same precision as kernel
        y_f32 = reference(x, weights, biases)        # module-exact f32 reference
        assert jnp.allclose(y, y_b16, atol=1e-2, rtol=1e-2), (y, y_b16)
        assert jnp.allclose(y, y_f32, atol=5e-2, rtol=5e-2), (y, y_f32)

    key, k1, k2 = jax.random.split(key, 3)
    run_and_check(batch=4, kx=k1)    # tiny batch: single (8, 128) tile, grid=1
    run_and_check(batch=64, kx=k2)   # multi-step grid path: tile_b=32, grid=2

    print("KERNEL_OK")
</pallas_src>

<mosaic_0001>
module attributes {stable_mosaic.version = 11 : i64} {
  func.func @kernel(%arg0: i32, %arg1: memref<8x8xf32, #tpu.memory_space<vmem>>, %arg2: memref<9x128x128xbf16, #tpu.memory_space<vmem>>, %arg3: memref<9x1x128xf32, #tpu.memory_space<vmem>>, %arg4: memref<8x128xf32, #tpu.memory_space<vmem>>) attributes {dimension_semantics = [#tpu.dimension_semantics<parallel>], iteration_bounds = array<i64: 1>, scalar_prefetch = 0 : i64, scratch_operands = 0 : i64, tpu.core_type = #tpu.core_type<tc>, window_params = [{transform_indices = @transform_0, window_bounds = array<i64: 8, 8>}, {pipeline_mode = #tpu.pipeline_mode<synchronous>, transform_indices = @transform_1, window_bounds = array<i64: 9, 128, 128>}, {pipeline_mode = #tpu.pipeline_mode<synchronous>, transform_indices = @transform_2, window_bounds = array<i64: 9, 1, 128>}, {transform_indices = @transform_3, window_bounds = array<i64: 8, 128>}]} {
    %c0 = arith.constant 0 : index
    %c0_0 = arith.constant 0 : index
    %0 = vector.load %arg1[%c0, %c0_0] : memref<8x8xf32, #tpu.memory_space<vmem>>, vector<8x8xf32>
    %1 = arith.truncf %0 : vector<8x8xf32> to vector<8x8xbf16>
    %cst = arith.constant 0.000000e+00 : bf16
    %2 = vector.broadcast %cst : bf16 to vector<8x120xbf16>
    %3 = tpu.concatenate %1, %2 in 1 : vector<8x8xbf16>, vector<8x120xbf16> -> vector<8x128xbf16>
    %c0_1 = arith.constant 0 : index
    %c0_2 = arith.constant 0 : index
    %c0_3 = arith.constant 0 : index
    %4 = vector.load %arg2[%c0_1, %c0_2, %c0_3] : memref<9x128x128xbf16, #tpu.memory_space<vmem>>, vector<1x128x128xbf16>
    %5 = vector.shape_cast %4 : vector<1x128x128xbf16> to vector<128x128xbf16>
    %cst_4 = arith.constant dense<0.000000e+00> : vector<8x128xf32>
    %6 = tpu.matmul %3, %5, %cst_4 {dimension_numbers = #tpu.dot_dimension_numbers<[1], [0], [0], [1], [0, 0, 1, 1], [], []>} : vector<8x128xbf16>, vector<128x128xbf16>, vector<8x128xf32> -> vector<8x128xf32>
    %c0_5 = arith.constant 0 : index
    %c0_6 = arith.constant 0 : index
    %c0_7 = arith.constant 0 : index
    %7 = vector.load %arg3[%c0_5, %c0_6, %c0_7] : memref<9x1x128xf32, #tpu.memory_space<vmem>>, vector<1x1x128xf32>
    %8 = vector.shape_cast %7 : vector<1x1x128xf32> to vector<1x128xf32>
    %9 = vector.broadcast %8 : vector<1x128xf32> to vector<8x128xf32>
    %10 = arith.addf %6, %9 : vector<8x128xf32>
    %11 = math.tanh %10 : vector<8x128xf32>
    %12 = arith.truncf %11 : vector<8x128xf32> to vector<8x128xbf16>
    %c1 = arith.constant 1 : index
    %c0_8 = arith.constant 0 : index
    %c0_9 = arith.constant 0 : index
    %13 = vector.load %arg2[%c1, %c0_8, %c0_9] : memref<9x128x128xbf16, #tpu.memory_space<vmem>>, vector<1x128x128xbf16>
    %14 = vector.shape_cast %13 : vector<1x128x128xbf16> to vector<128x128xbf16>
    %cst_10 = arith.constant dense<0.000000e+00> : vector<8x128xf32>
    %15 = tpu.matmul %12, %14, %cst_10 {dimension_numbers = #tpu.dot_dimension_numbers<[1], [0], [0], [1], [0, 0, 1, 1], [], []>} : vector<8x128xbf16>, vector<128x128xbf16>, vector<8x128xf32> -> vector<8x128xf32>
    %c1_11 = arith.constant 1 : index
    %c0_12 = arith.constant 0 : index
    %c0_13 = arith.constant 0 : index
    %16 = vector.load %arg3[%c1_11, %c0_12, %c0_13] : memref<9x1x128xf32, #tpu.memory_space<vmem>>, vector<1x1x128xf32>
    %17 = vector.shape_cast %16 : vector<1x1x128xf32> to vector<1x128xf32>
    %18 = vector.broadcast %17 : vector<1x128xf32> to vector<8x128xf32>
    %19 = arith.addf %15, %18 : vector<8x128xf32>
    %20 = math.tanh %19 : vector<8x128xf32>
    %21 = arith.truncf %20 : vector<8x128xf32> to vector<8x128xbf16>
    %c2 = arith.constant 2 : index
    %c0_14 = arith.constant 0 : index
    %c0_15 = arith.constant 0 : index
    %22 = vector.load %arg2[%c2, %c0_14, %c0_15] : memref<9x128x128xbf16, #tpu.memory_space<vmem>>, vector<1x128x128xbf16>
    %23 = vector.shape_cast %22 : vector<1x128x128xbf16> to vector<128x128xbf16>
    %cst_16 = arith.constant dense<0.000000e+00> : vector<8x128xf32>
    %24 = tpu.matmul %21, %23, %cst_16 {dimension_numbers = #tpu.dot_dimension_numbers<[1], [0], [0], [1], [0, 0, 1, 1], [], []>} : vector<8x128xbf16>, vector<128x128xbf16>, vector<8x128xf32> -> vector<8x128xf32>
    %c2_17 = arith.constant 2 : index
    %c0_18 = arith.constant 0 : index
    %c0_19 = arith.constant 0 : index
    %25 = vector.load %arg3[%c2_17, %c0_18, %c0_19] : memref<9x1x128xf32, #tpu.memory_space<vmem>>, vector<1x1x128xf32>
    %26 = vector.shape_cast %25 : vector<1x1x128xf32> to vector<1x128xf32>
    %27 = vector.broadcast %26 : vector<1x128xf32> to vector<8x128xf32>
    %28 = arith.addf %24, %27 : vector<8x128xf32>
    %29 = math.tanh %28 : vector<8x128xf32>
    %30 = arith.truncf %29 : vector<8x128xf32> to vector<8x128xbf16>
    %c3 = arith.constant 3 : index
    %c0_20 = arith.constant 0 : index
    %c0_21 = arith.constant 0 : index
    %31 = vector.load %arg2[%c3, %c0_20, %c0_21] : memref<9x128x128xbf16, #tpu.memory_space<vmem>>, vector<1x128x128xbf16>
    %32 = vector.shape_cast %31 : vector<1x128x128xbf16> to vector<128x128xbf16>
    %cst_22 = arith.constant dense<0.000000e+00> : vector<8x128xf32>
    %33 = tpu.matmul %30, %32, %cst_22 {dimension_numbers = #tpu.dot_dimension_numbers<[1], [0], [0], [1], [0, 0, 1, 1], [], []>} : vector<8x128xbf16>, vector<128x128xbf16>, vector<8x128xf32> -> vector<8x128xf32>
    %c3_23 = arith.constant 3 : index
    %c0_24 = arith.constant 0 : index
    %c0_25 = arith.constant 0 : index
    %34 = vector.load %arg3[%c3_23, %c0_24, %c0_25] : memref<9x1x128xf32, #tpu.memory_space<vmem>>, vector<1x1x128xf32>
    %35 = vector.shape_cast %34 : vector<1x1x128xf32> to vector<1x128xf32>
    %36 = vector.broadcast %35 : vector<1x128xf32> to vector<8x128xf32>
    %37 = arith.addf %33, %36 : vector<8x128xf32>
    %38 = math.tanh %37 : vector<8x128xf32>
    %39 = arith.truncf %38 : vector<8x128xf32> to vector<8x128xbf16>
    %c4 = arith.constant 4 : index
    %c0_26 = arith.constant 0 : index
    %c0_27 = arith.constant 0 : index
    %40 = vector.load %arg2[%c4, %c0_26, %c0_27] : memref<9x128x128xbf16, #tpu.memory_space<vmem>>, vector<1x128x128xbf16>
    %41 = vector.shape_cast %40 : vector<1x128x128xbf16> to vector<128x128xbf16>
    %cst_28 = arith.constant dense<0.000000e+00> : vector<8x128xf32>
    %42 = tpu.matmul %39, %41, %cst_28 {dimension_numbers = #tpu.dot_dimension_numbers<[1], [0], [0], [1], [0, 0, 1, 1], [], []>} : vector<8x128xbf16>, vector<128x128xbf16>, vector<8x128xf32> -> vector<8x128xf32>
    %c4_29 = arith.constant 4 : index
    %c0_30 = arith.constant 0 : index
    %c0_31 = arith.constant 0 : index
    %43 = vector.load %arg3[%c4_29, %c0_30, %c0_31] : memref<9x1x128xf32, #tpu.memory_space<vmem>>, vector<1x1x128xf32>
    %44 = vector.shape_cast %43 : vector<1x1x128xf32> to vector<1x128xf32>
    %45 = vector.broadcast %44 : vector<1x128xf32> to vector<8x128xf32>
    %46 = arith.addf %42, %45 : vector<8x128xf32>
    %47 = math.tanh %46 : vector<8x128xf32>
    %48 = arith.truncf %47 : vector<8x128xf32> to vector<8x128xbf16>
    %c5 = arith.constant 5 : index
    %c0_32 = arith.constant 0 : index
    %c0_33 = arith.constant 0 : index
    %49 = vector.load %arg2[%c5, %c0_32, %c0_33] : memref<9x128x128xbf16, #tpu.memory_space<vmem>>, vector<1x128x128xbf16>
    %50 = vector.shape_cast %49 : vector<1x128x128xbf16> to vector<128x128xbf16>
    %cst_34 = arith.constant dense<0.000000e+00> : vector<8x128xf32>
    %51 = tpu.matmul %48, %50, %cst_34 {dimension_numbers = #tpu.dot_dimension_numbers<[1], [0], [0], [1], [0, 0, 1, 1], [], []>} : vector<8x128xbf16>, vector<128x128xbf16>, vector<8x128xf32> -> vector<8x128xf32>
    %c5_35 = arith.constant 5 : index
    %c0_36 = arith.constant 0 : index
    %c0_37 = arith.constant 0 : index
    %52 = vector.load %arg3[%c5_35, %c0_36, %c0_37] : memref<9x1x128xf32, #tpu.memory_space<vmem>>, vector<1x1x128xf32>
    %53 = vector.shape_cast %52 : vector<1x1x128xf32> to vector<1x128xf32>
    %54 = vector.broadcast %53 : vector<1x128xf32> to vector<8x128xf32>
    %55 = arith.addf %51, %54 : vector<8x128xf32>
    %56 = math.tanh %55 : vector<8x128xf32>
    %57 = arith.truncf %56 : vector<8x128xf32> to vector<8x128xbf16>
    %c6 = arith.constant 6 : index
    %c0_38 = arith.constant 0 : index
    %c0_39 = arith.constant 0 : index
    %58 = vector.load %arg2[%c6, %c0_38, %c0_39] : memref<9x128x128xbf16, #tpu.memory_space<vmem>>, vector<1x128x128xbf16>
    %59 = vector.shape_cast %58 : vector<1x128x128xbf16> to vector<128x128xbf16>
    %cst_40 = arith.constant dense<0.000000e+00> : vector<8x128xf32>
    %60 = tpu.matmul %57, %59, %cst_40 {dimension_numbers = #tpu.dot_dimension_numbers<[1], [0], [0], [1], [0, 0, 1, 1], [], []>} : vector<8x128xbf16>, vector<128x128xbf16>, vector<8x128xf32> -> vector<8x128xf32>
    %c6_41 = arith.constant 6 : index
    %c0_42 = arith.constant 0 : index
    %c0_43 = arith.constant 0 : index
    %61 = vector.load %arg3[%c6_41, %c0_42, %c0_43] : memref<9x1x128xf32, #tpu.memory_space<vmem>>, vector<1x1x128xf32>
    %62 = vector.shape_cast %61 : vector<1x1x128xf32> to vector<1x128xf32>
    %63 = vector.broadcast %62 : vector<1x128xf32> to vector<8x128xf32>
    %64 = arith.addf %60, %63 : vector<8x128xf32>
    %65 = math.tanh %64 : vector<8x128xf32>
    %66 = arith.truncf %65 : vector<8x128xf32> to vector<8x128xbf16>
    %c7 = arith.constant 7 : index
    %c0_44 = arith.constant 0 : index
    %c0_45 = arith.constant 0 : index
    %67 = vector.load %arg2[%c7, %c0_44, %c0_45] : memref<9x128x128xbf16, #tpu.memory_space<vmem>>, vector<1x128x128xbf16>
    %68 = vector.shape_cast %67 : vector<1x128x128xbf16> to vector<128x128xbf16>
    %cst_46 = arith.constant dense<0.000000e+00> : vector<8x128xf32>
    %69 = tpu.matmul %66, %68, %cst_46 {dimension_numbers = #tpu.dot_dimension_numbers<[1], [0], [0], [1], [0, 0, 1, 1], [], []>} : vector<8x128xbf16>, vector<128x128xbf16>, vector<8x128xf32> -> vector<8x128xf32>
    %c7_47 = arith.constant 7 : index
    %c0_48 = arith.constant 0 : index
    %c0_49 = arith.constant 0 : index
    %70 = vector.load %arg3[%c7_47, %c0_48, %c0_49] : memref<9x1x128xf32, #tpu.memory_space<vmem>>, vector<1x1x128xf32>
    %71 = vector.shape_cast %70 : vector<1x1x128xf32> to vector<1x128xf32>
    %72 = vector.broadcast %71 : vector<1x128xf32> to vector<8x128xf32>
    %73 = arith.addf %69, %72 : vector<8x128xf32>
    %74 = math.tanh %73 : vector<8x128xf32>
    %75 = arith.truncf %74 : vector<8x128xf32> to vector<8x128xbf16>
    %c8 = arith.constant 8 : index
    %c0_50 = arith.constant 0 : index
    %c0_51 = arith.constant 0 : index
    %76 = vector.load %arg2[%c8, %c0_50, %c0_51] : memref<9x128x128xbf16, #tpu.memory_space<vmem>>, vector<1x128x128xbf16>
    %77 = vector.shape_cast %76 : vector<1x128x128xbf16> to vector<128x128xbf16>
    %cst_52 = arith.constant dense<0.000000e+00> : vector<8x128xf32>
    %78 = tpu.matmul %75, %77, %cst_52 {dimension_numbers = #tpu.dot_dimension_numbers<[1], [0], [0], [1], [0, 0, 1, 1], [], []>} : vector<8x128xbf16>, vector<128x128xbf16>, vector<8x128xf32> -> vector<8x128xf32>
    %c8_53 = arith.constant 8 : index
    %c0_54 = arith.constant 0 : index
    %c0_55 = arith.constant 0 : index
    %79 = vector.load %arg3[%c8_53, %c0_54, %c0_55] : memref<9x1x128xf32, #tpu.memory_space<vmem>>, vector<1x1x128xf32>
    %80 = vector.shape_cast %79 : vector<1x1x128xf32> to vector<1x128xf32>
    %81 = vector.broadcast %80 : vector<1x128xf32> to vector<8x128xf32>
    %82 = arith.addf %78, %81 : vector<8x128xf32>
    %c0_56 = arith.constant 0 : index
    %c0_57 = arith.constant 0 : index
    %83 = vector.load %arg4[%c0_56, %c0_57] : memref<8x128xf32, #tpu.memory_space<vmem>>, vector<8x128xf32>
    tpu.vector_store %arg4[%c0_56, %c0_57], %82 {strides = array<i32>} : memref<8x128xf32, #tpu.memory_space<vmem>>, vector<8x128xf32>,
    return
  }
  func.func @transform_0(%arg0: i32) -> (i32, i32) {
    %c0_i32 = arith.constant 0 : i32
    %c0_i32_0 = arith.constant 0 : i32
    return %arg0, %c0_i32 : i32, i32
  }
  func.func @transform_1(%arg0: i32) -> (i32, i32, i32) {
    %c0_i32 = arith.constant 0 : i32
    %c0_i32_0 = arith.constant 0 : i32
    %c0_i32_1 = arith.constant 0 : i32
    %c0_i32_2 = arith.constant 0 : i32
    return %c0_i32, %c0_i32_0, %c0_i32_1 : i32, i32, i32
  }
  func.func @transform_2(%arg0: i32) -> (i32, i32, i32) {
    %c0_i32 = arith.constant 0 : i32
    %c0_i32_0 = arith.constant 0 : i32
    %c0_i32_1 = arith.constant 0 : i32
    %c0_i32_2 = arith.constant 0 : i32
    return %c0_i32, %c0_i32_0, %c0_i32_1 : i32, i32, i32
  }
  func.func @transform_3(%arg0: i32) -> (i32, i32) {
    %c0_i32 = arith.constant 0 : i32
    %c0_i32_0 = arith.constant 0 : i32
    return %arg0, %c0_i32 : i32, i32
  }
}

</mosaic_0001>

<bundles_post_ra>
// kernel: diamond_forward.1
= control target key start
LH: loop header
LB: loop body
LE: loop exit
PB: predicated region body
PF: predicated region fallthrough
CT: control target
= control target key end

     0   :  { %8 = vsyncpa [#allocation3], 0  ;;  %s1541_s12 = smov [#allocation2]   ;;  %s1701_s0 = inlined_call_operand.vmem [shape: f32[8,8], index: 0, kind: input, shape index: {}]   ;;  %s1702_s1 = inlined_call_operand.hbm [shape: bf16[9,128,128], index: 1, kind: input, shape index: {}]   ;;  %s1703_s2 = inlined_call_operand.vmem [shape: f32[9,1,128], index: 2, kind: input, shape index: {}]   ;;  %s1704_s3 = inlined_call_operand.vmem [shape: f32[8,128], index: 3, kind: output, shape index: {}]  }
   0x1   :  { %s16_s13 = sshll.u32 %s1541_s12, 4  ;;  %s1517_s16 = scalar_lea.hbm %s1702_s1, 9216  ;;  %s17_s13 = int_to_ptr.vmem [resolvable:$true] %s16_s13 }
   0x2   :  { %p1518_p0 = scmp.ne.s32.totalorder %s1702_s1, %s1517_s16  ;;  %p1521_p1 = scmp.lt.u32.totalorder %s1517_s16, %s1702_s1 }
   0x4   :  { %p1523_p2 = pnand %p1521_p1, %p1518_p0 }
   0x6   :  { %1526 = shalt.err (!%p1523_p2)
}
   0x7   :  { %s1527_s21 = scalar_lea.vmem %s17_s13, 9216  ;;  %p1532_p4 = scmp.lt.s32.totalorder %s17_s13, %s17_s13 }
   0x8   :  { %p1528_p3 = scmp.ne.s32.totalorder %s17_s13, %s1527_s21  ;;  %p1533_p5 = scmp.lt.s32.totalorder %s1527_s21, %s1527_s21 }
   0xa   :  { %p1534_p6 = por %p1533_p5, %p1532_p4 }
   0xc   :  { %p1535_p7 = pnand %p1534_p6, %p1528_p3 }
   0xe   :  { %1538 = shalt.err (!%p1535_p7)
}
   0xf   :  { %s1542_s22 = smov 64   ;;  %s1543_s23 = smov 4  }
  0x10   :  { %22 = dma.hbm_to_vmem [thread:$0]  %s1702_s1, 9216, %s17_s13, [#allocation3], %s1542_s22, %s1542_s22, %s1543_s23  }
  0x11   :  { %1539 = dma.done.wait [#allocation3], 9216  }
  0x12   :  { %1540 = vsyncadd [#allocation3], 4294958080  ;;  %v1544_v0 = vmov 0.0   ;;  %vm1545_vm0 = vmmov 0   ;;  %v1429_v1 = vld [vmem:[#allocation2] sm:$0xff]   ;;  %v1430_v2 = vld [vmem:[#allocation2 + $0x8] sm:$0xff]  }
  0x13   :  { %1244 = vmatprep.subr.bf16.mxu0 %v1544_v0  ;;  %1260 = vmatprep.mubr.msk.bf16.mxu0 %vm1545_vm0, %v1544_v0  ;;  %v1431_v3 = vld [vmem:[#allocation2 + $0x10] sm:$0xff]   ;;  %v1437_v4 = vld [vmem:[#allocation2 + $0x40] sm:$0xff]   ;;  %v1432_v5 = vld [vmem:[#allocation2 + $0x18] sm:$0xff]   ;;  %vm31_vm1 = vcmask 64512  }
  0x14   :  { %1264 = vmatprep.subr.bf16.mxu1 %v1544_v0  ;;  %1280 = vmatprep.mubr.msk.bf16.mxu1 %vm1545_vm0, %v1544_v0  ;;  %v1438_v6 = vld [vmem:[#allocation2 + $0x48] sm:$0xff]   ;;  %v1433_v7 = vld [vmem:[#allocation2 + $0x20] sm:$0xff]   ;;  %v1439_v8 = vld [vmem:[#allocation2 + $0x50] sm:$0xff]  }
  0x15   :  { %1245 = vmatpush3.bf16.msra.mxu0 %v1429_v1  ;;  %1265 = vmatpush3.bf16.msra.mxu1 %v1437_v4  ;;  %v1434_v9 = vld [vmem:[#allocation2 + $0x28] sm:$0xff]   ;;  %v1440_v10 = vld [vmem:[#allocation2 + $0x58] sm:$0xff]   ;;  %v1435_v11 = vld [vmem:[#allocation2 + $0x30] sm:$0xff]  }
  0x16   :  { %1246 = vmatprep.subr.bf16.mxu0 %v1544_v0  ;;  %1266 = vmatprep.subr.bf16.mxu1 %v1544_v0  ;;  %v1436_v12 = vld [vmem:[#allocation2 + $0x38] sm:$0xff]   ;;  %v29_v13 = vld [vmem:[%s1701_s0] sm:$0xff]  ;;  %v1442_v16 = vld [vmem:[#allocation2 + $0x68] sm:$0xff]  }
  0x17   :  { %v30_v14 = vpack.c.bf16 %v29_v13, %v29_v13  ;;  %v1441_v15 = vld [vmem:[#allocation2 + $0x60] sm:$0xff]   ;;  %v1443_v17 = vld [vmem:[#allocation2 + $0x70] sm:$0xff]   ;;  %v1444_v18 = vld [vmem:[#allocation2 + $0x78] sm:$0xff]  }
  0x18   :  { %v1445_v19 = vld [vmem:[#allocation2 + $0x80] sm:$0xff]   ;;  %v1446_v20 = vld [vmem:[#allocation2 + $0x88] sm:$0xff]   ;;  %v1447_v21 = vld [vmem:[#allocation2 + $0x90] sm:$0xff]  }
  0x19   :  { %1247 = vmatpush3.bf16.msra.mxu0 %v1430_v2  ;;  %1267 = vmatpush3.bf16.msra.mxu1 %v1438_v6  ;;  %v1448_v22 = vld [vmem:[#allocation2 + $0x98] sm:$0xff]   ;;  %v1073_v23 = vld [vmem:[%s1703_s2] ss:$0 sm:$0xff]  ;;  %v1450_v32 = vld [vmem:[#allocation2 + $0xa8] sm:$0xff]  }
  0x1a   :  { %1248 = vmatprep.subr.bf16.mxu0 %v1544_v0  ;;  %1268 = vmatprep.subr.bf16.mxu1 %v1544_v0  ;;  %v1449_v31 = vld [vmem:[#allocation2 + $0xa0] sm:$0xff]   ;;  %v1451_v33 = vld [vmem:[#allocation2 + $0xb0] sm:$0xff]   ;;  %v1452_v34 = vld [vmem:[#allocation2 + $0xb8] sm:$0xff]  }
  0x1b   :  { %v1453_v35 = vld [vmem:[#allocation2 + $0xc0] sm:$0xff]   ;;  %v1454_v36 = vld [vmem:[#allocation2 + $0xc8] sm:$0xff]   ;;  %v1455_v37 = vld [vmem:[#allocation2 + $0xd0] sm:$0xff]  }
  0x1c   :  { %v1456_v38 = vld [vmem:[#allocation2 + $0xd8] sm:$0xff]   ;;  %v1084_v39 = vld [vmem:[%s1703_s2 + $0x1] ss:$0 sm:$0xff]  ;;  %v1458_v48 = vld [vmem:[#allocation2 + $0xe8] sm:$0xff]  }
  0x1d   :  { %1249 = vmatpush3.bf16.msra.mxu0 %v1431_v3  ;;  %1269 = vmatpush3.bf16.msra.mxu1 %v1439_v8  ;;  %v1457_v47 = vld [vmem:[#allocation2 + $0xe0] sm:$0xff]   ;;  %v1459_v49 = vld [vmem:[#allocation2 + $0xf0] sm:$0xff]   ;;  %v1460_v50 = vld [vmem:[#allocation2 + $0xf8] sm:$0xff]  }
  0x1e   :  { %1250 = vmatprep.subr.bf16.mxu0 %v1544_v0  ;;  %1270 = vmatprep.subr.bf16.mxu1 %v1544_v0  ;;  %v1461_v51 = vld [vmem:[#allocation2 + $0x100] sm:$0xff]   ;;  %v1462_v52 = vld [vmem:[#allocation2 + $0x108] sm:$0xff]   ;;  %v1463_v53 = vld [vmem:[#allocation2 + $0x110] sm:$0xff]  }
  0x1f   :  { %v1464_v54 = vld [vmem:[#allocation2 + $0x118] sm:$0xff]   ;;  %v1094_v55 = vld [vmem:[%s1703_s2 + $0x2] ss:$0 sm:$0xff]  ;;  %v1466_v1 = vld [vmem:[#allocation2 + $0x128] sm:$0xff]  }
  0x20   :  { %v1465_v63 = vld [vmem:[#allocation2 + $0x120] sm:$0xff]   ;;  %v1467_v2 = vld [vmem:[#allocation2 + $0x130] sm:$0xff]   ;;  %v1468_v3 = vld [vmem:[#allocation2 + $0x138] sm:$0xff]  }
  0x21   :  { %1251 = vmatpush3.bf16.msra.mxu0 %v1432_v5  ;;  %1271 = vmatpush3.bf16.msra.mxu1 %v1440_v10  ;;  %v1469_v4 = vld [vmem:[#allocation2 + $0x140] sm:$0xff]   ;;  %v1470_v5 = vld [vmem:[#allocation2 + $0x148] sm:$0xff]   ;;  %v1471_v6 = vld [vmem:[#allocation2 + $0x150] sm:$0xff]  }
  0x22   :  { %1252 = vmatprep.subr.bf16.mxu0 %v1544_v0  ;;  %1272 = vmatprep.subr.bf16.mxu1 %v1544_v0  ;;  %v1104_v8 = vld [vmem:[%s1703_s2 + $0x3] ss:$0 sm:$0xff] }
  0x25   :  { %1253 = vmatpush3.bf16.msra.mxu0 %v1433_v7  ;;  %1273 = vmatpush3.bf16.msra.mxu1 %v1441_v15  ;;  %v1472_v7 = vld [vmem:[#allocation2 + $0x158] sm:$0xff]  }
  0x26   :  { %1254 = vmatprep.subr.bf16.mxu0 %v1544_v0  ;;  %1274 = vmatprep.subr.bf16.mxu1 %v1544_v0 }
  0x29   :  { %1255 = vmatpush3.bf16.msra.mxu0 %v1434_v9  ;;  %1275 = vmatpush3.bf16.msra.mxu1 %v1442_v16  ;;  %v1473_v16 = vld [vmem:[#allocation2 + $0x160] sm:$0xff]  }
  0x2a   :  { %1256 = vmatprep.subr.bf16.mxu0 %v1544_v0  ;;  %1276 = vmatprep.subr.bf16.mxu1 %v1544_v0 }
  0x2d   :  { %1257 = vmatpush3.bf16.msra.mxu0 %v1435_v11  ;;  %1277 = vmatpush3.bf16.msra.mxu1 %v1443_v17  ;;  %v1474_v17 = vld [vmem:[#allocation2 + $0x168] sm:$0xff]  }
  0x2e   :  { %1258 = vmatprep.subr.bf16.mxu0 %v1544_v0  ;;  %1278 = vmatprep.subr.bf16.mxu1 %v1544_v0 }
  0x31   :  { %1259 = vmatpush3.bf16.msra.mxu0 %v1436_v12  ;;  %1279 = vmatpush3.bf16.msra.mxu1 %v1444_v18  ;;  %v1475_v18 = vld [vmem:[#allocation2 + $0x170] sm:$0xff]  }
  0x32   :  { %1284 = vmatprep.subr.bf16.mxu0 %v1544_v0  ;;  %1304 = vmatprep.subr.bf16.mxu1 %v1544_v0 }
  0x34   :  { %1261 = vmatmul.mubr.msk.bf16.vlgmr.msra.gmra.mrb[0].mxu0 %vm31_vm1, %v30_v14 }
  0x35   :  { %1300 = vmatprep.mubr.msk.bf16.mxu0 %vm1545_vm0, %v1544_v0  ;;  %1285 = vmatpush3.bf16.msra.mxu0 %v1445_v19  ;;  %v1476_v19 = vld [vmem:[#allocation2 + $0x178] sm:$0xff]  }
  0x36   :  { %1286 = vmatprep.subr.bf16.mxu0 %v1544_v0 }
  0x39   :  { %1287 = vmatpush3.bf16.msra.mxu0 %v1446_v20  ;;  %v1477_v20 = vld [vmem:[#allocation2 + $0x180] sm:$0xff]  }
  0x3a   :  { %1288 = vmatprep.subr.bf16.mxu0 %v1544_v0 }
  0x3d   :  { %1289 = vmatpush3.bf16.msra.mxu0 %v1447_v21  ;;  %v1478_v21 = vld [vmem:[#allocation2 + $0x188] sm:$0xff]  }
  0x3e   :  { %1290 = vmatprep.subr.bf16.mxu0 %v1544_v0 }
  0x41   :  { %1291 = vmatpush3.bf16.msra.mxu0 %v1448_v22  ;;  %v1479_v22 = vld [vmem:[#allocation2 + $0x190] sm:$0xff]  }
  0x42   :  { %1292 = vmatprep.subr.bf16.mxu0 %v1544_v0 }
  0x45   :  { %1293 = vmatpush3.bf16.msra.mxu0 %v1449_v31 }
  0x46   :  { %1294 = vmatprep.subr.bf16.mxu0 %v1544_v0 }
  0x49   :  { %1295 = vmatpush3.bf16.msra.mxu0 %v1450_v32  ;;  %v1481_v32 = vld [vmem:[#allocation2 + $0x1a0] sm:$0xff]  }
  0x4a   :  { %1296 = vmatprep.subr.bf16.mxu0 %v1544_v0 }
  0x4d   :  { %1297 = vmatpush3.bf16.msra.mxu0 %v1451_v33  ;;  %v1482_v33 = vld [vmem:[#allocation2 + $0x1a8] sm:$0xff]  }
  0x4e   :  { %1298 = vmatprep.subr.bf16.mxu0 %v1544_v0 }
  0x51   :  { %1299 = vmatpush3.bf16.msra.mxu0 %v1452_v34  ;;  %v1483_v34 = vld [vmem:[#allocation2 + $0x1b0] sm:$0xff]  }
  0x52   :  { %1324 = vmatprep.subr.bf16.mxu0 %v1544_v0 }
 0x107   :  { %v141_v24 = vpop.f32.mrb[0].mxu0 }
 0x108   :  { %v142_v25 = vadd.f32 %v1073_v23, %v141_v24  ;;  %v1262_v26 = vpop.f32.mrb[1].mxu0  ;;  %v1480_v23 = vld [vmem:[#allocation2 + $0x198] sm:$0xff]   ;;  %v1114_v24 = vld [vmem:[%s1703_s2 + $0x4] ss:$0 sm:$0xff] }
 0x109   :  { %v144_v27 = vpop.f32.mrb[2].mxu0 }
 0x10a   :  { %1501 = vtanh.f32 %v142_v25  ;;  %v1263_v28 = vpop.f32.mrb[3].mxu0 }
 0x114   :  { %v1502_v29 = vpop.eup %1501 }
 0x115   :  { %v148_v30 = vpack.c.bf16 %v1502_v29, %v1502_v29 }
 0x117   :  { %1281 = vmatmul.mubr.bf16.vlgmr.msra.gmra.mrb[0].mxu1 %v148_v30 }
 0x118   :  { %1320 = vmatprep.mubr.msk.bf16.mxu1 %vm1545_vm0, %v1544_v0  ;;  %1305 = vmatpush3.bf16.msra.mxu1 %v1453_v35  ;;  %v1484_v35 = vld [vmem:[#allocation2 + $0x1b8] sm:$0xff]  }
 0x119   :  { %1306 = vmatprep.subr.bf16.mxu1 %v1544_v0 }
 0x11c   :  { %1307 = vmatpush3.bf16.msra.mxu1 %v1454_v36  ;;  %v1485_v36 = vld [vmem:[#allocation2 + $0x1c0] sm:$0xff]  }
 0x11d   :  { %1308 = vmatprep.subr.bf16.mxu1 %v1544_v0 }
 0x120   :  { %1309 = vmatpush3.bf16.msra.mxu1 %v1455_v37  ;;  %v1486_v37 = vld [vmem:[#allocation2 + $0x1c8] sm:$0xff]  }
 0x121   :  { %1310 = vmatprep.subr.bf16.mxu1 %v1544_v0 }
 0x124   :  { %1311 = vmatpush3.bf16.msra.mxu1 %v1456_v38  ;;  %v1487_v38 = vld [vmem:[#allocation2 + $0x1d0] sm:$0xff]  }
 0x125   :  { %1312 = vmatprep.subr.bf16.mxu1 %v1544_v0 }
 0x128   :  { %1313 = vmatpush3.bf16.msra.mxu1 %v1457_v47 }
 0x129   :  { %1314 = vmatprep.subr.bf16.mxu1 %v1544_v0 }
 0x12c   :  { %1315 = vmatpush3.bf16.msra.mxu1 %v1458_v48  ;;  %v1489_v48 = vld [vmem:[#allocation2 + $0x1e0] sm:$0xff]  }
 0x12d   :  { %1316 = vmatprep.subr.bf16.mxu1 %v1544_v0 }
 0x130   :  { %1317 = vmatpush3.bf16.msra.mxu1 %v1459_v49  ;;  %v1490_v49 = vld [vmem:[#allocation2 + $0x1e8] sm:$0xff]  }
 0x131   :  { %1318 = vmatprep.subr.bf16.mxu1 %v1544_v0 }
 0x134   :  { %1319 = vmatpush3.bf16.msra.mxu1 %v1460_v50  ;;  %v1491_v50 = vld [vmem:[#allocation2 + $0x1f0] sm:$0xff]  }
 0x135   :  { %1344 = vmatprep.subr.bf16.mxu1 %v1544_v0 }
 0x1ea   :  { %v256_v40 = vpop.f32.mrb[0].mxu1 }
 0x1eb   :  { %v257_v41 = vadd.f32 %v1084_v39, %v256_v40  ;;  %v1282_v42 = vpop.f32.mrb[1].mxu1  ;;  %v1488_v39 = vld [vmem:[#allocation2 + $0x1d8] sm:$0xff]   ;;  %v1124_v40 = vld [vmem:[%s1703_s2 + $0x5] ss:$0 sm:$0xff] }
 0x1ec   :  { %v259_v43 = vpop.f32.mrb[2].mxu1 }
 0x1ed   :  { %1503 = vtanh.f32 %v257_v41  ;;  %v1283_v44 = vpop.f32.mrb[3].mxu1 }
 0x1f7   :  { %v1504_v45 = vpop.eup %1503 }
 0x1f8   :  { %v263_v46 = vpack.c.bf16 %v1504_v45, %v1504_v45 }
 0x1fa   :  { %1301 = vmatmul.mubr.bf16.vlgmr.msra.gmra.mrb[4].mxu0 %v263_v46 }
 0x1fb   :  { %1340 = vmatprep.mubr.msk.bf16.mxu0 %vm1545_vm0, %v1544_v0  ;;  %1325 = vmatpush3.bf16.msra.mxu0 %v1461_v51  ;;  %v1492_v51 = vld [vmem:[#allocation2 + $0x1f8] sm:$0xff]  }
 0x1fc   :  { %1326 = vmatprep.subr.bf16.mxu0 %v1544_v0 }
 0x1ff   :  { %1327 = vmatpush3.bf16.msra.mxu0 %v1462_v52  ;;  %v1493_v52 = vld [vmem:[#allocation2 + $0x200] sm:$0xff]  }
 0x200   :  { %1328 = vmatprep.subr.bf16.mxu0 %v1544_v0 }
 0x203   :  { %1329 = vmatpush3.bf16.msra.mxu0 %v1463_v53  ;;  %v1494_v53 = vld [vmem:[#allocation2 + $0x208] sm:$0xff]  }
 0x204   :  { %1330 = vmatprep.subr.bf16.mxu0 %v1544_v0 }
 0x207   :  { %1331 = vmatpush3.bf16.msra.mxu0 %v1464_v54  ;;  %v1495_v54 = vld [vmem:[#allocation2 + $0x210] sm:$0xff]  }
 0x208   :  { %1332 = vmatprep.subr.bf16.mxu0 %v1544_v0 }
 0x20b   :  { %1333 = vmatpush3.bf16.msra.mxu0 %v1465_v63 }
 0x20c   :  { %1334 = vmatprep.subr.bf16.mxu0 %v1544_v0 }
 0x20f   :  { %1335 = vmatpush3.bf16.msra.mxu0 %v1466_v1  ;;  %v1497_v1 = vld [vmem:[#allocation2 + $0x220] sm:$0xff]  }
 0x210   :  { %1336 = vmatprep.subr.bf16.mxu0 %v1544_v0 }
 0x213   :  { %1337 = vmatpush3.bf16.msra.mxu0 %v1467_v2  ;;  %v1498_v2 = vld [vmem:[#allocation2 + $0x228] sm:$0xff]  }
 0x214   :  { %1338 = vmatprep.subr.bf16.mxu0 %v1544_v0 }
 0x217   :  { %1339 = vmatpush3.bf16.msra.mxu0 %v1468_v3  ;;  %v1499_v3 = vld [vmem:[#allocation2 + $0x230] sm:$0xff]  }
 0x218   :  { %1364 = vmatprep.subr.bf16.mxu0 %v1544_v0 }
 0x2cd   :  { %v371_v56 = vpop.f32.mrb[4].mxu0 }
 0x2ce   :  { %v372_v57 = vadd.f32 %v1094_v55, %v371_v56  ;;  %v1302_v58 = vpop.f32.mrb[5].mxu0  ;;  %v1496_v55 = vld [vmem:[#allocation2 + $0x218] sm:$0xff]   ;;  %v1134_v56 = vld [vmem:[%s1703_s2 + $0x6] ss:$0 sm:$0xff] }
 0x2cf   :  { %v374_v59 = vpop.f32.mrb[6].mxu0 }
 0x2d0   :  { %1505 = vtanh.f32 %v372_v57  ;;  %v1303_v60 = vpop.f32.mrb[7].mxu0 }
 0x2da   :  { %v1506_v61 = vpop.eup %1505 }
 0x2db   :  { %v378_v62 = vpack.c.bf16 %v1506_v61, %v1506_v61 }
 0x2dd   :  { %1321 = vmatmul.mubr.bf16.vlgmr.msra.gmra.mrb[4].mxu1 %v378_v62 }
 0x2de   :  { %1360 = vmatprep.mubr.msk.bf16.mxu1 %vm1545_vm0, %v1544_v0  ;;  %1345 = vmatpush3.bf16.msra.mxu1 %v1469_v4  ;;  %v1500_v4 = vld [vmem:[#allocation2 + $0x238] sm:$0xff]  }
 0x2df   :  { %1346 = vmatprep.subr.bf16.mxu1 %v1544_v0 }
 0x2e2   :  { %1347 = vmatpush3.bf16.msra.mxu1 %v1470_v5  ;;  %v1144_v5 = vld [vmem:[%s1703_s2 + $0x7] ss:$0 sm:$0xff] }
 0x2e3   :  { %1348 = vmatprep.subr.bf16.mxu1 %v1544_v0 }
 0x2e6   :  { %1349 = vmatpush3.bf16.msra.mxu1 %v1471_v6 }
 0x2e7   :  { %1350 = vmatprep.subr.bf16.mxu1 %v1544_v0 }
 0x2ea   :  { %1351 = vmatpush3.bf16.msra.mxu1 %v1472_v7 }
 0x2eb   :  { %1352 = vmatprep.subr.bf16.mxu1 %v1544_v0 }
 0x2ee   :  { %1353 = vmatpush3.bf16.msra.mxu1 %v1473_v16 }
 0x2ef   :  { %1354 = vmatprep.subr.bf16.mxu1 %v1544_v0 }
 0x2f2   :  { %1355 = vmatpush3.bf16.msra.mxu1 %v1474_v17 }
 0x2f3   :  { %1356 = vmatprep.subr.bf16.mxu1 %v1544_v0 }
 0x2f6   :  { %1357 = vmatpush3.bf16.msra.mxu1 %v1475_v18 }
 0x2f7   :  { %1358 = vmatprep.subr.bf16.mxu1 %v1544_v0 }
 0x2fa   :  { %1359 = vmatpush3.bf16.msra.mxu1 %v1476_v19 }
 0x2fb   :  { %1384 = vmatprep.subr.bf16.mxu1 %v1544_v0 }
 0x3b0   :  { %v486_v9 = vpop.f32.mrb[4].mxu1 }
 0x3b1   :  { %v487_v10 = vadd.f32 %v1104_v8, %v486_v9  ;;  %v1322_v11 = vpop.f32.mrb[5].mxu1 }
 0x3b2   :  { %v489_v12 = vpop.f32.mrb[6].mxu1 }
 0x3b3   :  { %1507 = vtanh.f32 %v487_v10  ;;  %v1323_v13 = vpop.f32.mrb[7].mxu1 }
 0x3b4   :  { %v1154_v13 = vld [vmem:[%s1703_s2 + $0x8] ss:$0 sm:$0xff] }
 0x3bd   :  { %v1508_v14 = vpop.eup %1507 }
 0x3be   :  { %v493_v15 = vpack.c.bf16 %v1508_v14, %v1508_v14 }
 0x3c0   :  { %1341 = vmatmul.mubr.bf16.vlgmr.msra.gmra.mrb[8].mxu0 %v493_v15 }
 0x3c1   :  { %1380 = vmatprep.mubr.msk.bf16.mxu0 %vm1545_vm0, %v1544_v0  ;;  %1365 = vmatpush3.bf16.msra.mxu0 %v1477_v20 }
 0x3c2   :  { %1366 = vmatprep.subr.bf16.mxu0 %v1544_v0 }
 0x3c5   :  { %1367 = vmatpush3.bf16.msra.mxu0 %v1478_v21 }
 0x3c6   :  { %1368 = vmatprep.subr.bf16.mxu0 %v1544_v0 }
 0x3c9   :  { %1369 = vmatpush3.bf16.msra.mxu0 %v1479_v22 }
 0x3ca   :  { %1370 = vmatprep.subr.bf16.mxu0 %v1544_v0 }
 0x3cd   :  { %1371 = vmatpush3.bf16.msra.mxu0 %v1480_v23 }
 0x3ce   :  { %1372 = vmatprep.subr.bf16.mxu0 %v1544_v0 }
 0x3d1   :  { %1373 = vmatpush3.bf16.msra.mxu0 %v1481_v32 }
 0x3d2   :  { %1374 = vmatprep.subr.bf16.mxu0 %v1544_v0 }
 0x3d5   :  { %1375 = vmatpush3.bf16.msra.mxu0 %v1482_v33 }
 0x3d6   :  { %1376 = vmatprep.subr.bf16.mxu0 %v1544_v0 }
 0x3d9   :  { %1377 = vmatpush3.bf16.msra.mxu0 %v1483_v34 }
 0x3da   :  { %1378 = vmatprep.subr.bf16.mxu0 %v1544_v0 }
 0x3dd   :  { %1379 = vmatpush3.bf16.msra.mxu0 %v1484_v35 }
 0x3de   :  { %1404 = vmatprep.subr.bf16.mxu0 %v1544_v0 }
 0x493   :  { %v601_v25 = vpop.f32.mrb[8].mxu0 }
 0x494   :  { %v602_v26 = vadd.f32 %v1114_v24, %v601_v25  ;;  %v1342_v27 = vpop.f32.mrb[9].mxu0 }
 0x495   :  { %v604_v28 = vpop.f32.mrb[10].mxu0 }
 0x496   :  { %1509 = vtanh.f32 %v602_v26  ;;  %v1343_v29 = vpop.f32.mrb[11].mxu0 }
 0x4a0   :  { %v1510_v30 = vpop.eup %1509 }
 0x4a1   :  { %v608_v31 = vpack.c.bf16 %v1510_v30, %v1510_v30 }
 0x4a3   :  { %1361 = vmatmul.mubr.bf16.vlgmr.msra.gmra.mrb[8].mxu1 %v608_v31 }
 0x4a4   :  { %1400 = vmatprep.mubr.msk.bf16.mxu1 %vm1545_vm0, %v1544_v0  ;;  %1385 = vmatpush3.bf16.msra.mxu1 %v1485_v36 }
 0x4a5   :  { %1386 = vmatprep.subr.bf16.mxu1 %v1544_v0 }
 0x4a8   :  { %1387 = vmatpush3.bf16.msra.mxu1 %v1486_v37 }
 0x4a9   :  { %1388 = vmatprep.subr.bf16.mxu1 %v1544_v0 }
 0x4ac   :  { %1389 = vmatpush3.bf16.msra.mxu1 %v1487_v38 }
 0x4ad   :  { %1390 = vmatprep.subr.bf16.mxu1 %v1544_v0 }
 0x4b0   :  { %1391 = vmatpush3.bf16.msra.mxu1 %v1488_v39 }
 0x4b1   :  { %1392 = vmatprep.subr.bf16.mxu1 %v1544_v0 }
 0x4b4   :  { %1393 = vmatpush3.bf16.msra.mxu1 %v1489_v48 }
 0x4b5   :  { %1394 = vmatprep.subr.bf16.mxu1 %v1544_v0 }
 0x4b8   :  { %1395 = vmatpush3.bf16.msra.mxu1 %v1490_v49 }
 0x4b9   :  { %1396 = vmatprep.subr.bf16.mxu1 %v1544_v0 }
 0x4bc   :  { %1397 = vmatpush3.bf16.msra.mxu1 %v1491_v50 }
 0x4bd   :  { %1398 = vmatprep.subr.bf16.mxu1 %v1544_v0 }
 0x4c0   :  { %1399 = vmatpush3.bf16.msra.mxu1 %v1492_v51 }
 0x576   :  { %v716_v41 = vpop.f32.mrb[8].mxu1 }
 0x577   :  { %v717_v42 = vadd.f32 %v1124_v40, %v716_v41  ;;  %v1362_v43 = vpop.f32.mrb[9].mxu1 }
 0x578   :  { %v719_v44 = vpop.f32.mrb[10].mxu1 }
 0x579   :  { %1511 = vtanh.f32 %v717_v42  ;;  %v1363_v45 = vpop.f32.mrb[11].mxu1 }
 0x583   :  { %v1512_v46 = vpop.eup %1511 }
 0x584   :  { %v723_v47 = vpack.c.bf16 %v1512_v46, %v1512_v46 }
 0x586   :  { %1381 = vmatmul.mubr.bf16.vlgmr.msra.gmra.mrb[12].mxu0 %v723_v47 }
 0x587   :  { %1420 = vmatprep.mubr.msk.bf16.mxu0 %vm1545_vm0, %v1544_v0  ;;  %1405 = vmatpush3.bf16.msra.mxu0 %v1493_v52 }
 0x588   :  { %1406 = vmatprep.subr.bf16.mxu0 %v1544_v0 }
 0x58b   :  { %1407 = vmatpush3.bf16.msra.mxu0 %v1494_v53 }
 0x58c   :  { %1408 = vmatprep.subr.bf16.mxu0 %v1544_v0 }
 0x58f   :  { %1409 = vmatpush3.bf16.msra.mxu0 %v1495_v54 }
 0x590   :  { %1410 = vmatprep.subr.bf16.mxu0 %v1544_v0 }
 0x593   :  { %1411 = vmatpush3.bf16.msra.mxu0 %v1496_v55 }
 0x594   :  { %1412 = vmatprep.subr.bf16.mxu0 %v1544_v0 }
 0x597   :  { %1413 = vmatpush3.bf16.msra.mxu0 %v1497_v1 }
 0x598   :  { %1414 = vmatprep.subr.bf16.mxu0 %v1544_v0 }
 0x59b   :  { %1415 = vmatpush3.bf16.msra.mxu0 %v1498_v2 }
 0x59c   :  { %1416 = vmatprep.subr.bf16.mxu0 %v1544_v0 }
 0x59f   :  { %1417 = vmatpush3.bf16.msra.mxu0 %v1499_v3 }
 0x5a0   :  { %1418 = vmatprep.subr.bf16.mxu0 %v1544_v0 }
 0x5a3   :  { %1419 = vmatpush3.bf16.msra.mxu0 %v1500_v4 }
 0x659   :  { %v831_v57 = vpop.f32.mrb[12].mxu0 }
 0x65a   :  { %v832_v58 = vadd.f32 %v1134_v56, %v831_v57  ;;  %v1382_v59 = vpop.f32.mrb[13].mxu0 }
 0x65b   :  { %v834_v60 = vpop.f32.mrb[14].mxu0 }
 0x65c   :  { %1513 = vtanh.f32 %v832_v58  ;;  %v1383_v61 = vpop.f32.mrb[15].mxu0 }
 0x666   :  { %v1514_v62 = vpop.eup %1513 }
 0x667   :  { %v838_v63 = vpack.c.bf16 %v1514_v62, %v1514_v62 }
 0x669   :  { %1401 = vmatmul.mubr.bf16.vlgmr.msra.gmra.mrb[12].mxu1 %v838_v63 }
 0x73c   :  { %v946_v6 = vpop.f32.mrb[12].mxu1 }
 0x73d   :  { %v947_v7 = vadd.f32 %v1144_v5, %v946_v6  ;;  %v1402_v8 = vpop.f32.mrb[13].mxu1 }
 0x73e   :  { %v949_v9 = vpop.f32.mrb[14].mxu1 }
 0x73f   :  { %1515 = vtanh.f32 %v947_v7  ;;  %v1403_v10 = vpop.f32.mrb[15].mxu1 }
 0x749   :  { %v1516_v11 = vpop.eup %1515 }
 0x74a   :  { %v953_v12 = vpack.c.bf16 %v1516_v11, %v1516_v11 }
 0x74c   :  { %1421 = vmatmul.mubr.bf16.vlgmr.msra.gmra.mrb[16].mxu0 %v953_v12 }
 0x81f   :  { %v1061_v0 = vpop.f32.mrb[16].mxu0 }
 0x820   :  { %v1062_v14 = vadd.f32 %v1154_v13, %v1061_v0  ;;  %v1422_v15 = vpop.f32.mrb[17].mxu0 }
 0x821   :  { %v1064_v16 = vpop.f32.mrb[18].mxu0 }
 0x822   :  { %1067 = vst [vmem:[%s1704_s3] sm:$0xff] %v1062_v14  ;;  %v1423_v17 = vpop.f32.mrb[19].mxu0 }
 0x823   :  { %1072 = vsyncpa [#allocation3], 1 }

</bundles_post_ra>
